<compile_context>
chip_gen: v7x
topology: tpu7x:2x2x1
jax: 0.10.0
libtpu: 0.0.40
codegen_flags: <defaults>
</compile_context>

<pallas_src>
import functools
from math import sqrt

import jax
import jax.numpy as jnp
from jax import lax
from jax.experimental import pallas as pl
from jax.experimental.pallas import tpu as pltpu

# Finite "minus infinity" for masking: keeps the online softmax NaN-free even
# when a whole tile row is masked (exp underflows to exactly 0, matching the
# reference softmax for any row that has at least one unmasked key).
_MASK_VALUE = -1e30


def _pick_tile(n, target, align):
    """Largest multiple of `align` that divides n and is <= target, else n."""
    if n <= target:
        return n
    t = (target // align) * align
    while t >= align:
        if n % t == 0:
            return t
        t -= align
    return n  # fall back to a single full-size block


# --------------------------------------------------------------------------
# Per-head input projection:  (B, T, d_in) @ (G, d_in, dh) -> (B, G, T, dh)
# (G = H, 2H or 3H depending on how many of Q/K/V share this input.)
# --------------------------------------------------------------------------
def _head_proj_kernel(x_ref, w_ref, b_ref, o_ref):
    x = x_ref[0]                           # (Tt, d_in) - input dtype, no upcast
    G = w_ref.shape[0]
    for g in range(G):                     # static unroll over heads
        y = jnp.dot(x, w_ref[g], preferred_element_type=jnp.float32) + b_ref[g]
        o_ref[0, g] = y.astype(o_ref.dtype)


def head_projection(x, w3, b3, *, row_tile=256):
    """x: (B, T, d_in); w3: (G, d_in, dh); b3: (G, 1, dh) -> (B, G, T, dh)."""
    B, T, d_in = x.shape
    G, _, dh = w3.shape
    Tt = _pick_tile(T, row_tile, 8)
    grid = (B, T // Tt)
    return pl.pallas_call(
        _head_proj_kernel,
        out_shape=jax.ShapeDtypeStruct((B, G, T, dh), x.dtype),
        grid_spec=pltpu.PrefetchScalarGridSpec(
            num_scalar_prefetch=0,
            grid=grid,
            in_specs=[
                pl.BlockSpec((1, Tt, d_in), lambda b, i: (b, i, 0)),
                pl.BlockSpec((G, d_in, dh), lambda b, i: (0, 0, 0)),
                pl.BlockSpec((G, 1, dh), lambda b, i: (0, 0, 0)),
            ],
            out_specs=pl.BlockSpec((1, G, Tt, dh), lambda b, i: (b, 0, i, 0)),
        ),
        compiler_params=pltpu.CompilerParams(
            dimension_semantics=("parallel", "parallel")),
    )(x, w3, b3)


# --------------------------------------------------------------------------
# Output projection as a head-sum:  y[b, l, :] = sum_h out[b, h, l, :] @ wo[h]
# Consumes the head-major attention output directly (no transpose) and writes a
# lane-dense (Lt, d_model) block.
# --------------------------------------------------------------------------
def _out_proj_kernel(x_ref, w_ref, b_ref, y_ref):
    H = w_ref.shape[0]
    acc = jnp.dot(x_ref[0, 0], w_ref[0], preferred_element_type=jnp.float32)
    for h in range(1, H):                  # static unroll over heads
        acc = acc + jnp.dot(x_ref[0, h], w_ref[h],
                            preferred_element_type=jnp.float32)
    y_ref[0] = (acc + b_ref[...]).astype(y_ref.dtype)


def out_projection(x, w3, b, *, row_tile=256):
    """x: (B, H, L, dv); w3: (H, dv, d_model); b: (1, d_model) -> (B, L, d_model)."""
    B, H, L, dv = x.shape
    d_model = w3.shape[2]
    Lt = _pick_tile(L, row_tile, 8)
    grid = (B, L // Lt)
    return pl.pallas_call(
        _out_proj_kernel,
        out_shape=jax.ShapeDtypeStruct((B, L, d_model), x.dtype),
        grid_spec=pltpu.PrefetchScalarGridSpec(
            num_scalar_prefetch=0,
            grid=grid,
            in_specs=[
                pl.BlockSpec((1, H, Lt, dv), lambda b, i: (b, 0, i, 0)),
                pl.BlockSpec((H, dv, d_model), lambda b, i: (0, 0, 0)),
                pl.BlockSpec((1, d_model), lambda b, i: (0, 0)),
            ],
            out_specs=pl.BlockSpec((1, Lt, d_model), lambda b, i: (b, i, 0)),
        ),
        compiler_params=pltpu.CompilerParams(
            dimension_semantics=("parallel", "parallel")),
    )(x, w3, b)


# --------------------------------------------------------------------------
# Flash-style full attention over head-major tensors.
# grid = (B, L/Lt, S/St); KV axis is "arbitrary" with resident accumulators.
# --------------------------------------------------------------------------
def _flash_attn_kernel(*refs, scale, causal, has_mask, emit_attn):
    q_ref, k_ref, v_ref = refs[0:3]
    idx = 3
    mask_ref = refs[idx] if has_mask else None
    idx += 1 if has_mask else 0
    o_ref = refs[idx]
    idx += 1
    a_ref = refs[idx] if emit_attn else None
    idx += 1 if emit_attn else 0
    m_sc, l_sc, acc_sc = refs[idx], refs[idx + 1], refs[idx + 2]

    Lt = q_ref.shape[2]
    St = k_ref.shape[2]
    qi = pl.program_id(1)
    kv = pl.program_id(2)

    @pl.when(kv == 0)
    def _init():
        m_sc[...] = jnp.full_like(m_sc, -jnp.inf)
        l_sc[...] = jnp.zeros_like(l_sc)
        acc_sc[...] = jnp.zeros_like(acc_sc)
        if emit_attn:
            a_ref[...] = jnp.zeros_like(a_ref)

    def _update():
        q = q_ref[0]                       # (H, Lt, E)  - input dtype (bf16 ok)
        k = k_ref[0]                       # (H, St, E)
        v = v_ref[0]                       # (H, St, Dv)
        # Fold 1/sqrt(E) into q: O(H*Lt*E) instead of O(H*Lt*St) VPU work.
        s = jnp.einsum("hle,hse->hls", q * scale, k,
                       preferred_element_type=jnp.float32)  # (H, Lt, St) f32
        if causal:
            row = qi * Lt + lax.broadcasted_iota(jnp.int32, (Lt, St), 0)
            col = kv * St + lax.broadcasted_iota(jnp.int32, (Lt, St), 1)
            s = jnp.where((col > row)[None], _MASK_VALUE, s)
        if has_mask:
            s = jnp.where((mask_ref[0] != 0)[None], _MASK_VALUE, s)

        m_prev = m_sc[...]                                        # (H, Lt, 1)
        m_new = jnp.maximum(m_prev, jnp.max(s, axis=-1, keepdims=True))
        alpha = jnp.exp(m_prev - m_new)
        p = jnp.exp(s - m_new)                                    # (H, Lt, St)
        l_sc[...] = alpha * l_sc[...] + jnp.sum(p, axis=-1, keepdims=True)
        acc_sc[...] = alpha * acc_sc[...] + jnp.einsum(
            "hls,hsd->hld", p.astype(v.dtype), v,
            preferred_element_type=jnp.float32)                   # (H, Lt, Dv)
        m_sc[...] = m_new

        if emit_attn:
            # Rescale previously written KV tiles to the new running max, then
            # append this tile's unnormalized probabilities.
            a_ref[0] = (a_ref[0] * alpha).astype(a_ref.dtype)
            start = pl.multiple_of(kv * St, St)
            a_ref[0, :, :, pl.ds(start, St)] = p.astype(a_ref.dtype)

    if causal:
        # Skip KV tiles that lie entirely above the diagonal (fully masked).
        @pl.when(kv * St <= qi * Lt + (Lt - 1))
        def _():
            _update()
    else:
        _update()

    @pl.when(kv == pl.num_programs(2) - 1)
    def _finalize():
        inv_l = pl.reciprocal(l_sc[...], approx=True)             # EUP, (H,Lt,1)
        o_ref[0] = (acc_sc[...] * inv_l).astype(o_ref.dtype)
        if emit_attn:
            a_ref[0] = (a_ref[0] * inv_l).astype(a_ref.dtype)


def full_attention(q_arr, k_arr, v_arr, *, hq, hk, hv, n_heads, scale, causal,
                   mask=None, output_attention=True, q_tile=128, kv_tile=512):
    """q_arr: (B, Gq, L, E); k_arr: (B, Gk, S, E); v_arr: (B, Gv, S, Dv).

    hq/hk/hv are head-group block offsets (units of n_heads) selecting the
    query/key/value heads inside possibly fused projection outputs.
    Returns out (B, H, L, Dv) and optionally attn (B, H, L, S)."""
    B = q_arr.shape[0]
    H = n_heads
    L, E = q_arr.shape[2], q_arr.shape[3]
    S, Dv = k_arr.shape[2], v_arr.shape[3]
    Lt = _pick_tile(L, q_tile, 8)
    St = _pick_tile(S, kv_tile, 128)
    grid = (B, L // Lt, S // St)

    in_specs = [
        pl.BlockSpec((1, H, Lt, E), lambda b, i, j: (b, hq, i, 0)),
        pl.BlockSpec((1, H, St, E), lambda b, i, j: (b, hk, j, 0)),
        pl.BlockSpec((1, H, St, Dv), lambda b, i, j: (b, hv, j, 0)),
    ]
    args = [q_arr, k_arr, v_arr]
    if mask is not None:
        in_specs.append(pl.BlockSpec((1, Lt, St), lambda b, i, j: (b, i, j)))
        args.append(mask)

    out_shapes = [jax.ShapeDtypeStruct((B, H, L, Dv), q_arr.dtype)]
    out_specs = [pl.BlockSpec((1, H, Lt, Dv), lambda b, i, j: (b, 0, i, 0))]
    if output_attention:
        out_shapes.append(jax.ShapeDtypeStruct((B, H, L, S), q_arr.dtype))
        out_specs.append(pl.BlockSpec((1, H, Lt, S), lambda b, i, j: (b, 0, i, 0)))

    kern = functools.partial(_flash_attn_kernel, scale=scale, causal=causal,
                             has_mask=mask is not None,
                             emit_attn=output_attention)
    outs = pl.pallas_call(
        kern,
        out_shape=tuple(out_shapes),
        grid_spec=pltpu.PrefetchScalarGridSpec(
            num_scalar_prefetch=0,
            grid=grid,
            in_specs=in_specs,
            out_specs=tuple(out_specs),
            scratch_shapes=[pltpu.VMEM((H, Lt, 1), jnp.float32),   # running max
                            pltpu.VMEM((H, Lt, 1), jnp.float32),   # denominator
                            pltpu.VMEM((H, Lt, Dv), jnp.float32)]),  # accumulator
        compiler_params=pltpu.CompilerParams(
            dimension_semantics=("parallel", "parallel", "arbitrary")),
    )(*args)
    if output_attention:
        out, attn = outs
    else:
        out = outs[0] if isinstance(outs, (tuple, list)) else outs
        attn = None
    return out, attn


# --------------------------------------------------------------------------
# Parameters (per-head weight layouts are precomputed once, so no per-call or
# per-token transposes are needed).
# --------------------------------------------------------------------------
def init_params(key, d_model, n_heads, d_keys=None, d_values=None,
                dtype=jnp.float32):
    d_keys = d_keys or d_model // n_heads
    d_values = d_values or d_model // n_heads
    H = n_heads
    ks = jax.random.split(key, 8)

    def lin(kw, kb, d_in, d_out):
        w = jax.random.normal(kw, (d_in, d_out), dtype) * 0.02
        b = jax.random.normal(kb, (1, d_out), dtype) * 0.02
        return w, b

    wq, bq = lin(ks[0], ks[1], d_model, d_keys * H)
    wk, bk = lin(ks[2], ks[3], d_model, d_keys * H)
    wv, bv = lin(ks[4], ks[5], d_model, d_values * H)
    wo, bo = lin(ks[6], ks[7], d_values * H, d_model)

    def per_head(w, b, dh):
        # (d_in, H*dh) -> (H, d_in, dh);  (1, H*dh) -> (H, 1, dh)
        return (jnp.transpose(w.reshape(w.shape[0], -1, dh), (1, 0, 2)),
                b.reshape(-1, 1, dh))

    wq3, bq3 = per_head(wq, bq, d_keys)
    wk3, bk3 = per_head(wk, bk, d_keys)
    wv3, bv3 = per_head(wv, bv, d_values)

    params = dict(
        n_heads=H, d_keys=d_keys, d_values=d_values,
        wq=wq, bq=bq, wk=wk, bk=bk, wv=wv, bv=bv, wo=wo, bo=bo,   # for reference
        wq3=wq3, bq3=bq3, wk3=wk3, bk3=bk3, wv3=wv3, bv3=bv3,
        wo3=wo.reshape(H, d_values, d_model),
    )
    if d_keys == d_values:
        # Fused projection weights: [Q heads | K heads | V heads] / [K | V].
        params["wqkv3"] = jnp.concatenate([wq3, wk3, wv3], axis=0)
        params["bqkv3"] = jnp.concatenate([bq3, bk3, bv3], axis=0)
        params["wkv3"] = jnp.concatenate([wk3, wv3], axis=0)
        params["bkv3"] = jnp.concatenate([bk3, bv3], axis=0)
    return params


# --------------------------------------------------------------------------
# AttentionLayer forward
# --------------------------------------------------------------------------
def attention_layer(params, queries, keys, values, attn_mask=None, tau=None,
                    delta=None, *, mask_flag=True, output_attention=True,
                    q_tile=128, kv_tile=512, row_tile=256):
    B, L, _ = queries.shape
    _, S, _ = keys.shape
    H = params["n_heads"]

    fused_qkv = (queries is keys) and (keys is values) and ("wqkv3" in params)
    fused_kv = (not fused_qkv) and (keys is values) and ("wkv3" in params)

    if fused_qkv:
        # Self-attention: one fused QKV projection pass over the activations.
        qkv = head_projection(queries, params["wqkv3"], params["bqkv3"],
                              row_tile=row_tile)            # (B, 3H, L, dk)
        q_arr = k_arr = v_arr = qkv
        hq, hk, hv = 0, 1, 2
    else:
        q_arr = head_projection(queries, params["wq3"], params["bq3"],
                                row_tile=row_tile)          # (B, H, L, dk)
        hq = 0
        if fused_kv:
            kv_p = head_projection(keys, params["wkv3"], params["bkv3"],
                                   row_tile=row_tile)       # (B, 2H, S, dk)
            k_arr = v_arr = kv_p
            hk, hv = 0, 1
        else:
            k_arr = head_projection(keys, params["wk3"], params["bk3"],
                                    row_tile=row_tile)      # (B, H, S, dk)
            v_arr = head_projection(values, params["wv3"], params["bv3"],
                                    row_tile=row_tile)      # (B, H, S, dv)
            hk, hv = 0, 0

    dk = q_arr.shape[-1]
    scale = 1.0 / sqrt(dk)
    causal = mask_flag and (attn_mask is None)
    mask = None
    if mask_flag and attn_mask is not None:
        # Explicit boolean mask (True = masked), shape (B, L, S) or (B, 1, L, S).
        mask = attn_mask.reshape(B, L, S).astype(jnp.int32)

    out_h, attn = full_attention(
        q_arr, k_arr, v_arr, hq=hq, hk=hk, hv=hv, n_heads=H, scale=scale,
        causal=causal, mask=mask, output_attention=output_attention,
        q_tile=q_tile, kv_tile=kv_tile)                     # out_h: (B, H, L, dv)

    y = out_projection(out_h, params["wo3"], params["bo"], row_tile=row_tile)
    return y, attn


# --------------------------------------------------------------------------
# Pure-JAX reference for sanity checking
# --------------------------------------------------------------------------
def _reference(params, queries, keys, values, attn_mask=None, mask_flag=True):
    B, L, _ = queries.shape
    S = keys.shape[1]
    H = params["n_heads"]
    q = (queries @ params["wq"] + params["bq"]).reshape(B, L, H, -1)
    k = (keys @ params["wk"] + params["bk"]).reshape(B, S, H, -1)
    v = (values @ params["wv"] + params["bv"]).reshape(B, S, H, -1)
    E = q.shape[-1]
    scores = jnp.einsum("blhe,bshe->bhls", q, k)
    if mask_flag:
        if attn_mask is None:
            m = jnp.triu(jnp.ones((L, S), bool), k=1)[None, None]
        else:
            m = attn_mask.reshape(B, 1, L, S)
        scores = jnp.where(m, -jnp.inf, scores)
    A = jax.nn.softmax(scores / sqrt(E), axis=-1)
    V = jnp.einsum("bhls,bshd->blhd", A, v).reshape(B, L, -1)
    return V @ params["wo"] + params["bo"], A


if __name__ == "__main__":
    B, L, S, d_model, n_heads = 2, 8, 16, 32, 4
    key = jax.random.PRNGKey(0)
    k1, k2, k3, k4, k5 = jax.random.split(key, 5)
    params = init_params(k4, d_model, n_heads)

    # 1) self-attention (fused QKV), causal mask (attn_mask=None), attn output
    x = jax.random.normal(k1, (B, L, d_model), jnp.float32)
    out1, attn1 = attention_layer(params, x, x, x, attn_mask=None,
                                  mask_flag=True, output_attention=True)
    out1 = jax.block_until_ready(out1)
    ref_out1, ref_attn1 = _reference(params, x, x, x, attn_mask=None,
                                     mask_flag=True)
    assert out1.shape == (B, L, d_model)
    assert attn1.shape == (B, n_heads, L, L)
    assert jnp.allclose(out1, ref_out1, atol=2e-3, rtol=2e-3)
    assert jnp.allclose(attn1, ref_attn1, atol=2e-3, rtol=2e-3)

    # 2) cross-attention (keys is values -> fused KV), no mask, no attn output
    q_in = jax.random.normal(k2, (B, L, d_model), jnp.float32)
    kv_in = jax.random.normal(k3, (B, S, d_model), jnp.float32)
    out2, attn2 = attention_layer(params, q_in, kv_in, kv_in, attn_mask=None,
                                  mask_flag=False, output_attention=False)
    out2 = jax.block_until_ready(out2)
    ref_out2, _ = _reference(params, q_in, kv_in, kv_in, attn_mask=None,
                             mask_flag=False)
    assert attn2 is None
    assert jnp.allclose(out2, ref_out2, atol=2e-3, rtol=2e-3)

    # 3) explicit boolean mask (True = masked)
    m = jax.random.bernoulli(k5, 0.3, (B, L, S))
    m = m.at[:, :, 0].set(False)   # keep at least one visible key per row
    out3, attn3 = attention_layer(params, q_in, kv_in, kv_in, attn_mask=m,
                                  mask_flag=True, output_attention=True)
    out3 = jax.block_until_ready(out3)
    ref_out3, ref_attn3 = _reference(params, q_in, kv_in, kv_in, attn_mask=m,
                                     mask_flag=True)
    assert jnp.allclose(out3, ref_out3, atol=2e-3, rtol=2e-3)
    assert jnp.allclose(attn3, ref_attn3, atol=2e-3, rtol=2e-3)

    print("KERNEL_OK")
</pallas_src>

<mosaic_0001>
module attributes {stable_mosaic.version = 11 : i64} {
  func.func @_head_proj_kernel(%arg0: i32, %arg1: i32, %arg2: memref<1x8x32xf32, #tpu.memory_space<vmem>>, %arg3: memref<12x32x8xf32, #tpu.memory_space<vmem>>, %arg4: memref<12x1x8xf32, #tpu.memory_space<vmem>>, %arg5: memref<1x12x8x8xf32, #tpu.memory_space<vmem>>) attributes {dimension_semantics = [#tpu.dimension_semantics<parallel>, #tpu.dimension_semantics<parallel>], iteration_bounds = array<i64: 2, 1>, scalar_prefetch = 0 : i64, scratch_operands = 0 : i64, tpu.core_type = #tpu.core_type<tc>, window_params = [{transform_indices = @transform_0, window_bounds = array<i64: 1, 8, 32>}, {pipeline_mode = #tpu.pipeline_mode<synchronous>, transform_indices = @transform_1, window_bounds = array<i64: 12, 32, 8>}, {pipeline_mode = #tpu.pipeline_mode<synchronous>, transform_indices = @transform_2, window_bounds = array<i64: 12, 1, 8>}, {transform_indices = @transform_3, window_bounds = array<i64: 1, 12, 8, 8>}]} {
    %c0 = arith.constant 0 : index
    %c0_0 = arith.constant 0 : index
    %c0_1 = arith.constant 0 : index
    %0 = vector.load %arg2[%c0, %c0_0, %c0_1] : memref<1x8x32xf32, #tpu.memory_space<vmem>>, vector<1x8x32xf32>
    %1 = vector.shape_cast %0 : vector<1x8x32xf32> to vector<8x32xf32>
    %c0_2 = arith.constant 0 : index
    %c0_3 = arith.constant 0 : index
    %c0_4 = arith.constant 0 : index
    %2 = vector.load %arg3[%c0_2, %c0_3, %c0_4] : memref<12x32x8xf32, #tpu.memory_space<vmem>>, vector<1x32x8xf32>
    %3 = vector.shape_cast %2 : vector<1x32x8xf32> to vector<32x8xf32>
    %cst = arith.constant dense<0.000000e+00> : vector<8x8xf32>
    %4 = tpu.matmul %1, %3, %cst {dimension_numbers = #tpu.dot_dimension_numbers<[1], [0], [0], [1], [0, 0, 1, 1], [], []>} : vector<8x32xf32>, vector<32x8xf32>, vector<8x8xf32> -> vector<8x8xf32>
    %c0_5 = arith.constant 0 : index
    %c0_6 = arith.constant 0 : index
    %c0_7 = arith.constant 0 : index
    %5 = vector.load %arg4[%c0_5, %c0_6, %c0_7] : memref<12x1x8xf32, #tpu.memory_space<vmem>>, vector<1x1x8xf32>
    %6 = vector.shape_cast %5 : vector<1x1x8xf32> to vector<1x8xf32>
    %7 = vector.broadcast %6 : vector<1x8xf32> to vector<8x8xf32>
    %8 = arith.addf %4, %7 : vector<8x8xf32>
    %c0_8 = arith.constant 0 : index
    %c0_9 = arith.constant 0 : index
    %c0_10 = arith.constant 0 : index
    %c0_11 = arith.constant 0 : index
    %9 = vector.load %arg5[%c0_8, %c0_9, %c0_10, %c0_11] : memref<1x12x8x8xf32, #tpu.memory_space<vmem>>, vector<1x1x8x8xf32>
    %10 = vector.shape_cast %9 : vector<1x1x8x8xf32> to vector<8x8xf32>
    %11 = vector.shape_cast %8 : vector<8x8xf32> to vector<1x1x8x8xf32>
    tpu.vector_store %arg5[%c0_8, %c0_9, %c0_10, %c0_11], %11 {strides = array<i32>} : memref<1x12x8x8xf32, #tpu.memory_space<vmem>>, vector<1x1x8x8xf32>,
    %c1 = arith.constant 1 : index
    %c0_12 = arith.constant 0 : index
    %c0_13 = arith.constant 0 : index
    %12 = vector.load %arg3[%c1, %c0_12, %c0_13] : memref<12x32x8xf32, #tpu.memory_space<vmem>>, vector<1x32x8xf32>
    %13 = vector.shape_cast %12 : vector<1x32x8xf32> to vector<32x8xf32>
    %cst_14 = arith.constant dense<0.000000e+00> : vector<8x8xf32>
    %14 = tpu.matmul %1, %13, %cst_14 {dimension_numbers = #tpu.dot_dimension_numbers<[1], [0], [0], [1], [0, 0, 1, 1], [], []>} : vector<8x32xf32>, vector<32x8xf32>, vector<8x8xf32> -> vector<8x8xf32>
    %c1_15 = arith.constant 1 : index
    %c0_16 = arith.constant 0 : index
    %c0_17 = arith.constant 0 : index
    %15 = vector.load %arg4[%c1_15, %c0_16, %c0_17] : memref<12x1x8xf32, #tpu.memory_space<vmem>>, vector<1x1x8xf32>
    %16 = vector.shape_cast %15 : vector<1x1x8xf32> to vector<1x8xf32>
    %17 = vector.broadcast %16 : vector<1x8xf32> to vector<8x8xf32>
    %18 = arith.addf %14, %17 : vector<8x8xf32>
    %c0_18 = arith.constant 0 : index
    %c1_19 = arith.constant 1 : index
    %c0_20 = arith.constant 0 : index
    %c0_21 = arith.constant 0 : index
    %19 = vector.load %arg5[%c0_18, %c1_19, %c0_20, %c0_21] : memref<1x12x8x8xf32, #tpu.memory_space<vmem>>, vector<1x1x8x8xf32>
    %20 = vector.shape_cast %19 : vector<1x1x8x8xf32> to vector<8x8xf32>
    %21 = vector.shape_cast %18 : vector<8x8xf32> to vector<1x1x8x8xf32>
    tpu.vector_store %arg5[%c0_18, %c1_19, %c0_20, %c0_21], %21 {strides = array<i32>} : memref<1x12x8x8xf32, #tpu.memory_space<vmem>>, vector<1x1x8x8xf32>,
    %c2 = arith.constant 2 : index
    %c0_22 = arith.constant 0 : index
    %c0_23 = arith.constant 0 : index
    %22 = vector.load %arg3[%c2, %c0_22, %c0_23] : memref<12x32x8xf32, #tpu.memory_space<vmem>>, vector<1x32x8xf32>
    %23 = vector.shape_cast %22 : vector<1x32x8xf32> to vector<32x8xf32>
    %cst_24 = arith.constant dense<0.000000e+00> : vector<8x8xf32>
    %24 = tpu.matmul %1, %23, %cst_24 {dimension_numbers = #tpu.dot_dimension_numbers<[1], [0], [0], [1], [0, 0, 1, 1], [], []>} : vector<8x32xf32>, vector<32x8xf32>, vector<8x8xf32> -> vector<8x8xf32>
    %c2_25 = arith.constant 2 : index
    %c0_26 = arith.constant 0 : index
    %c0_27 = arith.constant 0 : index
    %25 = vector.load %arg4[%c2_25, %c0_26, %c0_27] : memref<12x1x8xf32, #tpu.memory_space<vmem>>, vector<1x1x8xf32>
    %26 = vector.shape_cast %25 : vector<1x1x8xf32> to vector<1x8xf32>
    %27 = vector.broadcast %26 : vector<1x8xf32> to vector<8x8xf32>
    %28 = arith.addf %24, %27 : vector<8x8xf32>
    %c0_28 = arith.constant 0 : index
    %c2_29 = arith.constant 2 : index
    %c0_30 = arith.constant 0 : index
    %c0_31 = arith.constant 0 : index
    %29 = vector.load %arg5[%c0_28, %c2_29, %c0_30, %c0_31] : memref<1x12x8x8xf32, #tpu.memory_space<vmem>>, vector<1x1x8x8xf32>
    %30 = vector.shape_cast %29 : vector<1x1x8x8xf32> to vector<8x8xf32>
    %31 = vector.shape_cast %28 : vector<8x8xf32> to vector<1x1x8x8xf32>
    tpu.vector_store %arg5[%c0_28, %c2_29, %c0_30, %c0_31], %31 {strides = array<i32>} : memref<1x12x8x8xf32, #tpu.memory_space<vmem>>, vector<1x1x8x8xf32>,
    %c3 = arith.constant 3 : index
    %c0_32 = arith.constant 0 : index
    %c0_33 = arith.constant 0 : index
    %32 = vector.load %arg3[%c3, %c0_32, %c0_33] : memref<12x32x8xf32, #tpu.memory_space<vmem>>, vector<1x32x8xf32>
    %33 = vector.shape_cast %32 : vector<1x32x8xf32> to vector<32x8xf32>
    %cst_34 = arith.constant dense<0.000000e+00> : vector<8x8xf32>
    %34 = tpu.matmul %1, %33, %cst_34 {dimension_numbers = #tpu.dot_dimension_numbers<[1], [0], [0], [1], [0, 0, 1, 1], [], []>} : vector<8x32xf32>, vector<32x8xf32>, vector<8x8xf32> -> vector<8x8xf32>
    %c3_35 = arith.constant 3 : index
    %c0_36 = arith.constant 0 : index
    %c0_37 = arith.constant 0 : index
    %35 = vector.load %arg4[%c3_35, %c0_36, %c0_37] : memref<12x1x8xf32, #tpu.memory_space<vmem>>, vector<1x1x8xf32>
    %36 = vector.shape_cast %35 : vector<1x1x8xf32> to vector<1x8xf32>
    %37 = vector.broadcast %36 : vector<1x8xf32> to vector<8x8xf32>
    %38 = arith.addf %34, %37 : vector<8x8xf32>
    %c0_38 = arith.constant 0 : index
    %c3_39 = arith.constant 3 : index
    %c0_40 = arith.constant 0 : index
    %c0_41 = arith.constant 0 : index
    %39 = vector.load %arg5[%c0_38, %c3_39, %c0_40, %c0_41] : memref<1x12x8x8xf32, #tpu.memory_space<vmem>>, vector<1x1x8x8xf32>
    %40 = vector.shape_cast %39 : vector<1x1x8x8xf32> to vector<8x8xf32>
    %41 = vector.shape_cast %38 : vector<8x8xf32> to vector<1x1x8x8xf32>
    tpu.vector_store %arg5[%c0_38, %c3_39, %c0_40, %c0_41], %41 {strides = array<i32>} : memref<1x12x8x8xf32, #tpu.memory_space<vmem>>, vector<1x1x8x8xf32>,
    %c4 = arith.constant 4 : index
    %c0_42 = arith.constant 0 : index
    %c0_43 = arith.constant 0 : index
    %42 = vector.load %arg3[%c4, %c0_42, %c0_43] : memref<12x32x8xf32, #tpu.memory_space<vmem>>, vector<1x32x8xf32>
    %43 = vector.shape_cast %42 : vector<1x32x8xf32> to vector<32x8xf32>
    %cst_44 = arith.constant dense<0.000000e+00> : vector<8x8xf32>
    %44 = tpu.matmul %1, %43, %cst_44 {dimension_numbers = #tpu.dot_dimension_numbers<[1], [0], [0], [1], [0, 0, 1, 1], [], []>} : vector<8x32xf32>, vector<32x8xf32>, vector<8x8xf32> -> vector<8x8xf32>
    %c4_45 = arith.constant 4 : index
    %c0_46 = arith.constant 0 : index
    %c0_47 = arith.constant 0 : index
    %45 = vector.load %arg4[%c4_45, %c0_46, %c0_47] : memref<12x1x8xf32, #tpu.memory_space<vmem>>, vector<1x1x8xf32>
    %46 = vector.shape_cast %45 : vector<1x1x8xf32> to vector<1x8xf32>
    %47 = vector.broadcast %46 : vector<1x8xf32> to vector<8x8xf32>
    %48 = arith.addf %44, %47 : vector<8x8xf32>
    %c0_48 = arith.constant 0 : index
    %c4_49 = arith.constant 4 : index
    %c0_50 = arith.constant 0 : index
    %c0_51 = arith.constant 0 : index
    %49 = vector.load %arg5[%c0_48, %c4_49, %c0_50, %c0_51] : memref<1x12x8x8xf32, #tpu.memory_space<vmem>>, vector<1x1x8x8xf32>
    %50 = vector.shape_cast %49 : vector<1x1x8x8xf32> to vector<8x8xf32>
    %51 = vector.shape_cast %48 : vector<8x8xf32> to vector<1x1x8x8xf32>
    tpu.vector_store %arg5[%c0_48, %c4_49, %c0_50, %c0_51], %51 {strides = array<i32>} : memref<1x12x8x8xf32, #tpu.memory_space<vmem>>, vector<1x1x8x8xf32>,
    %c5 = arith.constant 5 : index
    %c0_52 = arith.constant 0 : index
    %c0_53 = arith.constant 0 : index
    %52 = vector.load %arg3[%c5, %c0_52, %c0_53] : memref<12x32x8xf32, #tpu.memory_space<vmem>>, vector<1x32x8xf32>
    %53 = vector.shape_cast %52 : vector<1x32x8xf32> to vector<32x8xf32>
    %cst_54 = arith.constant dense<0.000000e+00> : vector<8x8xf32>
    %54 = tpu.matmul %1, %53, %cst_54 {dimension_numbers = #tpu.dot_dimension_numbers<[1], [0], [0], [1], [0, 0, 1, 1], [], []>} : vector<8x32xf32>, vector<32x8xf32>, vector<8x8xf32> -> vector<8x8xf32>
    %c5_55 = arith.constant 5 : index
    %c0_56 = arith.constant 0 : index
    %c0_57 = arith.constant 0 : index
    %55 = vector.load %arg4[%c5_55, %c0_56, %c0_57] : memref<12x1x8xf32, #tpu.memory_space<vmem>>, vector<1x1x8xf32>
    %56 = vector.shape_cast %55 : vector<1x1x8xf32> to vector<1x8xf32>
    %57 = vector.broadcast %56 : vector<1x8xf32> to vector<8x8xf32>
    %58 = arith.addf %54, %57 : vector<8x8xf32>
    %c0_58 = arith.constant 0 : index
    %c5_59 = arith.constant 5 : index
    %c0_60 = arith.constant 0 : index
    %c0_61 = arith.constant 0 : index
    %59 = vector.load %arg5[%c0_58, %c5_59, %c0_60, %c0_61] : memref<1x12x8x8xf32, #tpu.memory_space<vmem>>, vector<1x1x8x8xf32>
    %60 = vector.shape_cast %59 : vector<1x1x8x8xf32> to vector<8x8xf32>
    %61 = vector.shape_cast %58 : vector<8x8xf32> to vector<1x1x8x8xf32>
    tpu.vector_store %arg5[%c0_58, %c5_59, %c0_60, %c0_61], %61 {strides = array<i32>} : memref<1x12x8x8xf32, #tpu.memory_space<vmem>>, vector<1x1x8x8xf32>,
    %c6 = arith.constant 6 : index
    %c0_62 = arith.constant 0 : index
    %c0_63 = arith.constant 0 : index
    %62 = vector.load %arg3[%c6, %c0_62, %c0_63] : memref<12x32x8xf32, #tpu.memory_space<vmem>>, vector<1x32x8xf32>
    %63 = vector.shape_cast %62 : vector<1x32x8xf32> to vector<32x8xf32>
    %cst_64 = arith.constant dense<0.000000e+00> : vector<8x8xf32>
    %64 = tpu.matmul %1, %63, %cst_64 {dimension_numbers = #tpu.dot_dimension_numbers<[1], [0], [0], [1], [0, 0, 1, 1], [], []>} : vector<8x32xf32>, vector<32x8xf32>, vector<8x8xf32> -> vector<8x8xf32>
    %c6_65 = arith.constant 6 : index
    %c0_66 = arith.constant 0 : index
    %c0_67 = arith.constant 0 : index
    %65 = vector.load %arg4[%c6_65, %c0_66, %c0_67] : memref<12x1x8xf32, #tpu.memory_space<vmem>>, vector<1x1x8xf32>
    %66 = vector.shape_cast %65 : vector<1x1x8xf32> to vector<1x8xf32>
    %67 = vector.broadcast %66 : vector<1x8xf32> to vector<8x8xf32>
    %68 = arith.addf %64, %67 : vector<8x8xf32>
    %c0_68 = arith.constant 0 : index
    %c6_69 = arith.constant 6 : index
    %c0_70 = arith.constant 0 : index
    %c0_71 = arith.constant 0 : index
    %69 = vector.load %arg5[%c0_68, %c6_69, %c0_70, %c0_71] : memref<1x12x8x8xf32, #tpu.memory_space<vmem>>, vector<1x1x8x8xf32>
    %70 = vector.shape_cast %69 : vector<1x1x8x8xf32> to vector<8x8xf32>
    %71 = vector.shape_cast %68 : vector<8x8xf32> to vector<1x1x8x8xf32>
    tpu.vector_store %arg5[%c0_68, %c6_69, %c0_70, %c0_71], %71 {strides = array<i32>} : memref<1x12x8x8xf32, #tpu.memory_space<vmem>>, vector<1x1x8x8xf32>,
    %c7 = arith.constant 7 : index
    %c0_72 = arith.constant 0 : index
    %c0_73 = arith.constant 0 : index
    %72 = vector.load %arg3[%c7, %c0_72, %c0_73] : memref<12x32x8xf32, #tpu.memory_space<vmem>>, vector<1x32x8xf32>
    %73 = vector.shape_cast %72 : vector<1x32x8xf32> to vector<32x8xf32>
    %cst_74 = arith.constant dense<0.000000e+00> : vector<8x8xf32>
    %74 = tpu.matmul %1, %73, %cst_74 {dimension_numbers = #tpu.dot_dimension_numbers<[1], [0], [0], [1], [0, 0, 1, 1], [], []>} : vector<8x32xf32>, vector<32x8xf32>, vector<8x8xf32> -> vector<8x8xf32>
    %c7_75 = arith.constant 7 : index
    %c0_76 = arith.constant 0 : index
    %c0_77 = arith.constant 0 : index
    %75 = vector.load %arg4[%c7_75, %c0_76, %c0_77] : memref<12x1x8xf32, #tpu.memory_space<vmem>>, vector<1x1x8xf32>
    %76 = vector.shape_cast %75 : vector<1x1x8xf32> to vector<1x8xf32>
    %77 = vector.broadcast %76 : vector<1x8xf32> to vector<8x8xf32>
    %78 = arith.addf %74, %77 : vector<8x8xf32>
    %c0_78 = arith.constant 0 : index
    %c7_79 = arith.constant 7 : index
    %c0_80 = arith.constant 0 : index
    %c0_81 = arith.constant 0 : index
    %79 = vector.load %arg5[%c0_78, %c7_79, %c0_80, %c0_81] : memref<1x12x8x8xf32, #tpu.memory_space<vmem>>, vector<1x1x8x8xf32>
    %80 = vector.shape_cast %79 : vector<1x1x8x8xf32> to vector<8x8xf32>
    %81 = vector.shape_cast %78 : vector<8x8xf32> to vector<1x1x8x8xf32>
    tpu.vector_store %arg5[%c0_78, %c7_79, %c0_80, %c0_81], %81 {strides = array<i32>} : memref<1x12x8x8xf32, #tpu.memory_space<vmem>>, vector<1x1x8x8xf32>,
    %c8 = arith.constant 8 : index
    %c0_82 = arith.constant 0 : index
    %c0_83 = arith.constant 0 : index
    %82 = vector.load %arg3[%c8, %c0_82, %c0_83] : memref<12x32x8xf32, #tpu.memory_space<vmem>>, vector<1x32x8xf32>
    %83 = vector.shape_cast %82 : vector<1x32x8xf32> to vector<32x8xf32>
    %cst_84 = arith.constant dense<0.000000e+00> : vector<8x8xf32>
    %84 = tpu.matmul %1, %83, %cst_84 {dimension_numbers = #tpu.dot_dimension_numbers<[1], [0], [0], [1], [0, 0, 1, 1], [], []>} : vector<8x32xf32>, vector<32x8xf32>, vector<8x8xf32> -> vector<8x8xf32>
    %c8_85 = arith.constant 8 : index
    %c0_86 = arith.constant 0 : index
    %c0_87 = arith.constant 0 : index
    %85 = vector.load %arg4[%c8_85, %c0_86, %c0_87] : memref<12x1x8xf32, #tpu.memory_space<vmem>>, vector<1x1x8xf32>
    %86 = vector.shape_cast %85 : vector<1x1x8xf32> to vector<1x8xf32>
    %87 = vector.broadcast %86 : vector<1x8xf32> to vector<8x8xf32>
    %88 = arith.addf %84, %87 : vector<8x8xf32>
    %c0_88 = arith.constant 0 : index
    %c8_89 = arith.constant 8 : index
    %c0_90 = arith.constant 0 : index
    %c0_91 = arith.constant 0 : index
    %89 = vector.load %arg5[%c0_88, %c8_89, %c0_90, %c0_91] : memref<1x12x8x8xf32, #tpu.memory_space<vmem>>, vector<1x1x8x8xf32>
    %90 = vector.shape_cast %89 : vector<1x1x8x8xf32> to vector<8x8xf32>
    %91 = vector.shape_cast %88 : vector<8x8xf32> to vector<1x1x8x8xf32>
    tpu.vector_store %arg5[%c0_88, %c8_89, %c0_90, %c0_91], %91 {strides = array<i32>} : memref<1x12x8x8xf32, #tpu.memory_space<vmem>>, vector<1x1x8x8xf32>,
    %c9 = arith.constant 9 : index
    %c0_92 = arith.constant 0 : index
    %c0_93 = arith.constant 0 : index
    %92 = vector.load %arg3[%c9, %c0_92, %c0_93] : memref<12x32x8xf32, #tpu.memory_space<vmem>>, vector<1x32x8xf32>
    %93 = vector.shape_cast %92 : vector<1x32x8xf32> to vector<32x8xf32>
    %cst_94 = arith.constant dense<0.000000e+00> : vector<8x8xf32>
    %94 = tpu.matmul %1, %93, %cst_94 {dimension_numbers = #tpu.dot_dimension_numbers<[1], [0], [0], [1], [0, 0, 1, 1], [], []>} : vector<8x32xf32>, vector<32x8xf32>, vector<8x8xf32> -> vector<8x8xf32>
    %c9_95 = arith.constant 9 : index
    %c0_96 = arith.constant 0 : index
    %c0_97 = arith.constant 0 : index
    %95 = vector.load %arg4[%c9_95, %c0_96, %c0_97] : memref<12x1x8xf32, #tpu.memory_space<vmem>>, vector<1x1x8xf32>
    %96 = vector.shape_cast %95 : vector<1x1x8xf32> to vector<1x8xf32>
    %97 = vector.broadcast %96 : vector<1x8xf32> to vector<8x8xf32>
    %98 = arith.addf %94, %97 : vector<8x8xf32>
    %c0_98 = arith.constant 0 : index
    %c9_99 = arith.constant 9 : index
    %c0_100 = arith.constant 0 : index
    %c0_101 = arith.constant 0 : index
    %99 = vector.load %arg5[%c0_98, %c9_99, %c0_100, %c0_101] : memref<1x12x8x8xf32, #tpu.memory_space<vmem>>, vector<1x1x8x8xf32>
    %100 = vector.shape_cast %99 : vector<1x1x8x8xf32> to vector<8x8xf32>
    %101 = vector.shape_cast %98 : vector<8x8xf32> to vector<1x1x8x8xf32>
    tpu.vector_store %arg5[%c0_98, %c9_99, %c0_100, %c0_101], %101 {strides = array<i32>} : memref<1x12x8x8xf32, #tpu.memory_space<vmem>>, vector<1x1x8x8xf32>,
    %c10 = arith.constant 10 : index
    %c0_102 = arith.constant 0 : index
    %c0_103 = arith.constant 0 : index
    %102 = vector.load %arg3[%c10, %c0_102, %c0_103] : memref<12x32x8xf32, #tpu.memory_space<vmem>>, vector<1x32x8xf32>
    %103 = vector.shape_cast %102 : vector<1x32x8xf32> to vector<32x8xf32>
    %cst_104 = arith.constant dense<0.000000e+00> : vector<8x8xf32>
    %104 = tpu.matmul %1, %103, %cst_104 {dimension_numbers = #tpu.dot_dimension_numbers<[1], [0], [0], [1], [0, 0, 1, 1], [], []>} : vector<8x32xf32>, vector<32x8xf32>, vector<8x8xf32> -> vector<8x8xf32>
    %c10_105 = arith.constant 10 : index
    %c0_106 = arith.constant 0 : index
    %c0_107 = arith.constant 0 : index
    %105 = vector.load %arg4[%c10_105, %c0_106, %c0_107] : memref<12x1x8xf32, #tpu.memory_space<vmem>>, vector<1x1x8xf32>
    %106 = vector.shape_cast %105 : vector<1x1x8xf32> to vector<1x8xf32>
    %107 = vector.broadcast %106 : vector<1x8xf32> to vector<8x8xf32>
    %108 = arith.addf %104, %107 : vector<8x8xf32>
    %c0_108 = arith.constant 0 : index
    %c10_109 = arith.constant 10 : index
    %c0_110 = arith.constant 0 : index
    %c0_111 = arith.constant 0 : index
    %109 = vector.load %arg5[%c0_108, %c10_109, %c0_110, %c0_111] : memref<1x12x8x8xf32, #tpu.memory_space<vmem>>, vector<1x1x8x8xf32>
    %110 = vector.shape_cast %109 : vector<1x1x8x8xf32> to vector<8x8xf32>
    %111 = vector.shape_cast %108 : vector<8x8xf32> to vector<1x1x8x8xf32>
    tpu.vector_store %arg5[%c0_108, %c10_109, %c0_110, %c0_111], %111 {strides = array<i32>} : memref<1x12x8x8xf32, #tpu.memory_space<vmem>>, vector<1x1x8x8xf32>,
    %c11 = arith.constant 11 : index
    %c0_112 = arith.constant 0 : index
    %c0_113 = arith.constant 0 : index
    %112 = vector.load %arg3[%c11, %c0_112, %c0_113] : memref<12x32x8xf32, #tpu.memory_space<vmem>>, vector<1x32x8xf32>
    %113 = vector.shape_cast %112 : vector<1x32x8xf32> to vector<32x8xf32>
    %cst_114 = arith.constant dense<0.000000e+00> : vector<8x8xf32>
    %114 = tpu.matmul %1, %113, %cst_114 {dimension_numbers = #tpu.dot_dimension_numbers<[1], [0], [0], [1], [0, 0, 1, 1], [], []>} : vector<8x32xf32>, vector<32x8xf32>, vector<8x8xf32> -> vector<8x8xf32>
    %c11_115 = arith.constant 11 : index
    %c0_116 = arith.constant 0 : index
    %c0_117 = arith.constant 0 : index
    %115 = vector.load %arg4[%c11_115, %c0_116, %c0_117] : memref<12x1x8xf32, #tpu.memory_space<vmem>>, vector<1x1x8xf32>
    %116 = vector.shape_cast %115 : vector<1x1x8xf32> to vector<1x8xf32>
    %117 = vector.broadcast %116 : vector<1x8xf32> to vector<8x8xf32>
    %118 = arith.addf %114, %117 : vector<8x8xf32>
    %c0_118 = arith.constant 0 : index
    %c11_119 = arith.constant 11 : index
    %c0_120 = arith.constant 0 : index
    %c0_121 = arith.constant 0 : index
    %119 = vector.load %arg5[%c0_118, %c11_119, %c0_120, %c0_121] : memref<1x12x8x8xf32, #tpu.memory_space<vmem>>, vector<1x1x8x8xf32>
    %120 = vector.shape_cast %119 : vector<1x1x8x8xf32> to vector<8x8xf32>
    %121 = vector.shape_cast %118 : vector<8x8xf32> to vector<1x1x8x8xf32>
    tpu.vector_store %arg5[%c0_118, %c11_119, %c0_120, %c0_121], %121 {strides = array<i32>} : memref<1x12x8x8xf32, #tpu.memory_space<vmem>>, vector<1x1x8x8xf32>,
    return
  }
  func.func @transform_0(%arg0: i32, %arg1: i32) -> (i32, i32, i32) {
    %c0_i32 = arith.constant 0 : i32
    %c0_i32_0 = arith.constant 0 : i32
    return %arg0, %arg1, %c0_i32 : i32, i32, i32
  }
  func.func @transform_1(%arg0: i32, %arg1: i32) -> (i32, i32, i32) {
    %c0_i32 = arith.constant 0 : i32
    %c0_i32_0 = arith.constant 0 : i32
    %c0_i32_1 = arith.constant 0 : i32
    %c0_i32_2 = arith.constant 0 : i32
    return %c0_i32, %c0_i32_0, %c0_i32_1 : i32, i32, i32
  }
  func.func @transform_2(%arg0: i32, %arg1: i32) -> (i32, i32, i32) {
    %c0_i32 = arith.constant 0 : i32
    %c0_i32_0 = arith.constant 0 : i32
    %c0_i32_1 = arith.constant 0 : i32
    %c0_i32_2 = arith.constant 0 : i32
    return %c0_i32, %c0_i32_0, %c0_i32_1 : i32, i32, i32
  }
  func.func @transform_3(%arg0: i32, %arg1: i32) -> (i32, i32, i32, i32) {
    %c0_i32 = arith.constant 0 : i32
    %c0_i32_0 = arith.constant 0 : i32
    %c0_i32_1 = arith.constant 0 : i32
    return %arg0, %c0_i32, %arg1, %c0_i32_0 : i32, i32, i32, i32
  }
}

</mosaic_0001>

<bundles_post_ra>
// kernel: tpu_custom_call.1
= control target key start
LH: loop header
LB: loop body
LE: loop exit
PB: predicated region body
PF: predicated region fallthrough
CT: control target
= control target key end

     0   :  { %s1740_s12 = smov 0   ;;  %s1742_s13 = smov 0   ;;  %s2061_s0 = inlined_call_operand.vmem [shape: f32[2,8,32], index: 0, kind: input, shape index: {}]   ;;  %s2062_s1 = inlined_call_operand.vmem [shape: f32[12,32,8], index: 1, kind: input, shape index: {}]   ;;  %s2063_s2 = inlined_call_operand.vmem [shape: f32[12,1,8], index: 2, kind: input, shape index: {}]   ;;  %s2064_s3 = inlined_call_operand.vmem [shape: f32[2,12,8,8], index: 3, kind: output, shape index: {}]  }
   0x1   :  { %s1744_s14 = smov 0  }
   0x2 LB: > { %s25_s15 = sadd.s32 1, %s1711_s13  ;;  %p1306_p0 = scmp.ge.s32.totalorder %s1715_s14, 1  ;;  %s1715_s14 = sphi %s1744_s14, %s13_s14   ;;  %s1711_s13 = sphi %s1742_s13, %s2066_s13   ;;  %s1707_s12 = sphi %s1740_s12, %s2065_s12  }
   0x3   : > { %p27_p1 = scmp.ge.s32.totalorder %s25_s15, 2  ;;  %p155_p2 = scmp.lt.s32.totalorder %s1715_s14, 3 }
   0x5   : > { %s2068_s15 = smov (%p27_p1, %s25_s15), 0  ;;  %p156_p3 = pnand %p1306_p0, %p155_p2 }
   0x6   : > { %v200_v0 = vld [vmem:[%s2062_s1] sm:$0xff] (!%p156_p3)  ;;  %v201_v1 = vld [vmem:[%s2062_s1 + $0x8] sm:$0xff] (!%p156_p3)  ;;  %v1717_v3 = vmov (!%p156_p3), 0.0|0.0   ;;  %v202_v6 = vld [vmem:[%s2062_s1 + $0x10] sm:$0xff] (!%p156_p3)  ;;  %p184_p4 = scmp.lt.s32.totalorder (!%p156_p3), %s1707_s12, 1  ;;  %vm1718_vm0 = vmmov (!%p156_p3), 0  }
   0x7   : > { %159 = sbr.rel (%p156_p3) target bundleno = 273 (0x111), region = 32  ;;  %v1311_v2 = vld [vmem:[%s2062_s1 + $0x20] sm:$0xff] (!%p156_p3)  ;;  %1593 = vmatprep.subr.bf16.mxu0 (!%p156_p3), %v1717_v3  ;;  %1599 = vmatprep.subr.bf16.mxu1 (!%p156_p3), %v1717_v3  ;;  %v1594_v4 = vpack.c.bf16 (!%p156_p3), %v201_v1, %v200_v0  ;;  %v1312_v5 = vld [vmem:[%s2062_s1 + $0x28] sm:$0xff] (!%p156_p3)  ;;  %v203_v7 = vld [vmem:[%s2062_s1 + $0x18] sm:$0xff] (!%p156_p3)  ;;  %v1719_v11 = vmov (!%p156_p3), 0.0   ;;  %vm211_vm1 = vcmask (!%p156_p3), 261120  }
   0x8   : > { %v1600_v8 = vpack.c.bf16 (!%p156_p3), %v1312_v5, %v1311_v2  ;;  %v1313_v9 = vld [vmem:[%s2062_s1 + $0x30] sm:$0xff] (!%p156_p3)  ;;  %v1314_v10 = vld [vmem:[%s2062_s1 + $0x38] sm:$0xff] (!%p156_p3)  ;;  %1469 = vmatprep.mubr.msk.f32.mxu0 (!%p156_p3), %vm1718_vm0, %v1719_v11  ;;  %1480 = vmatprep.mubr.msk.f32.mxu1 (!%p156_p3), %vm1718_vm0, %v1719_v11  ;;  %v1597_v12 = vpack.c.bf16 (!%p156_p3), %v203_v7, %v202_v6  ;;  %v1319_v14 = vld [vmem:[%s2062_s1 + $0x40] sm:$0xff] (!%p156_p3)  ;;  %vm285_vm2 = vcmask (!%p156_p3), 64512  }
   0x9   : > { %1595 = vmatpush3.bf16.msra.mxu0 (!%p156_p3), %v1594_v4  ;;  %v1603_v13 = vpack.c.bf16 (!%p156_p3), %v1314_v10, %v1313_v9  ;;  %v1320_v15 = vld [vmem:[%s2062_s1 + $0x48] sm:$0xff] (!%p156_p3)  ;;  %v1327_v16 = vld [vmem:[%s2062_s1 + $0x60] sm:$0xff] (!%p156_p3)  ;;  %v1321_v21 = vld [vmem:[%s2062_s1 + $0x50] sm:$0xff] (!%p156_p3) }
   0xa   : > { %1601 = vmatpush3.bf16.msra.mxu1 (!%p156_p3), %v1600_v8  ;;  %1596 = vmatprep.subr.bf16.mxu0 (!%p156_p3), %v1717_v3  ;;  %v1328_v17 = vld [vmem:[%s2062_s1 + $0x68] sm:$0xff] (!%p156_p3)  ;;  %v1606_v19 = vpack.c.bf16 (!%p156_p3), %v1320_v15, %v1319_v14  ;;  %v1322_v22 = vld [vmem:[%s2062_s1 + $0x58] sm:$0xff] (!%p156_p3)  ;;  %v1329_v23 = vld [vmem:[%s2062_s1 + $0x70] sm:$0xff] (!%p156_p3) }
   0xb   : > { %1602 = vmatprep.subr.bf16.mxu1 (!%p156_p3), %v1717_v3  ;;  %v1612_v20 = vpack.c.bf16 (!%p156_p3), %v1328_v17, %v1327_v16  ;;  %v1330_v24 = vld [vmem:[%s2062_s1 + $0x78] sm:$0xff] (!%p156_p3)  ;;  %v1609_v25 = vpack.c.bf16 (!%p156_p3), %v1322_v22, %v1321_v21  ;;  %v1335_v27 = vld [vmem:[%s2062_s1 + $0x80] sm:$0xff] (!%p156_p3)  ;;  %v1336_v28 = vld [vmem:[%s2062_s1 + $0x88] sm:$0xff] (!%p156_p3) }
   0xc   : > { %v1615_v26 = vpack.c.bf16 (!%p156_p3), %v1330_v24, %v1329_v23  ;;  %v1343_v29 = vld [vmem:[%s2062_s1 + $0xa0] sm:$0xff] (!%p156_p3)  ;;  %v1344_v30 = vld [vmem:[%s2062_s1 + $0xa8] sm:$0xff] (!%p156_p3)  ;;  %v1618_v31 = vpack.c.bf16 (!%p156_p3), %v1336_v28, %v1335_v27  ;;  %v1337_v33 = vld [vmem:[%s2062_s1 + $0x90] sm:$0xff] (!%p156_p3) }
   0xd   : > { %1598 = vmatpush3.bf16.msra.mxu0 (!%p156_p3), %v1597_v12  ;;  %v1624_v32 = vpack.c.bf16 (!%p156_p3), %v1344_v30, %v1343_v29  ;;  %v1338_v34 = vld [vmem:[%s2062_s1 + $0x98] sm:$0xff] (!%p156_p3)  ;;  %v1345_v35 = vld [vmem:[%s2062_s1 + $0xb0] sm:$0xff] (!%p156_p3)  ;;  %v1351_v39 = vld [vmem:[%s2062_s1 + $0xc0] sm:$0xff] (!%p156_p3) }
   0xe   : > { %s2070_s12 = smov (!%p184_p4, %s1707_s12), 1  ;;  %1604 = vmatpush3.bf16.msra.mxu1 %v1603_v13  ;;  %1605 = vmatprep.subr.bf16.mxu0 %v1717_v3  ;;  %v1346_v36 = vld [vmem:[%s2062_s1 + $0xb8] sm:$0xff]  ;;  %v1621_v37 = vpack.c.bf16 %v1338_v34, %v1337_v33  ;;  %v1352_v40 = vld [vmem:[%s2062_s1 + $0xc8] sm:$0xff]  ;;  %v1359_v41 = vld [vmem:[%s2062_s1 + $0xe0] sm:$0xff] }
   0xf   : > { %s1307_s9 = sshll.u32 %s2070_s12, 3  ;;  %1611 = vmatprep.subr.bf16.mxu1 %v1717_v3  ;;  %v1627_v38 = vpack.c.bf16 %v1346_v36, %v1345_v35  ;;  %v1360_v42 = vld [vmem:[%s2062_s1 + $0xe8] sm:$0xff]  ;;  %v1630_v43 = vpack.c.bf16 %v1352_v40, %v1351_v39  ;;  %v1353_v45 = vld [vmem:[%s2062_s1 + $0xd0] sm:$0xff]  ;;  %v1354_v46 = vld [vmem:[%s2062_s1 + $0xd8] sm:$0xff]  ;;  %s1665_s24 = smul.u32 96, %s2070_s12 }
  0x10   : > { %s190_s20 = scalar_lea.vmem %s2061_s0, %s1307_s9  ;;  %v1636_v44 = vpack.c.bf16 %v1360_v42, %v1359_v41  ;;  %v1361_v47 = vld [vmem:[%s2062_s1 + $0xf0] sm:$0xff]  ;;  %v1362_v48 = vld [vmem:[%s2062_s1 + $0xf8] sm:$0xff]  ;;  %v1633_v49 = vpack.c.bf16 %v1354_v46, %v1353_v45  ;;  %v1367_v51 = vld [vmem:[%s2062_s1 + $0x100] sm:$0xff] }
  0x11   : > { %v1812_v18 = vld [vmem:[%s190_s20] sm:$0xff]  ;;  %v1639_v50 = vpack.c.bf16 %v1362_v48, %v1361_v47  ;;  %v1368_v52 = vld [vmem:[%s2062_s1 + $0x108] sm:$0xff]  ;;  %v1369_v57 = vld [vmem:[%s2062_s1 + $0x110] sm:$0xff]  ;;  %s1996_s4 = scalar_lea.vmem %s2064_s3, %s1665_s24 }
  0x12   : > { %1470 = vmatmul.mubr.msk.f32.vlgmr.msra.gmra.mrb[0].mxu0 %vm211_vm1, %v1812_v18  ;;  %1481 = vmatmul.mubr.msk.f32.vlgmr.msra.gmra.mrb[0].mxu1 %vm211_vm1, %v1812_v18  ;;  %v1375_v53 = vld [vmem:[%s2062_s1 + $0x120] sm:$0xff]  ;;  %v1376_v54 = vld [vmem:[%s2062_s1 + $0x128] sm:$0xff]  ;;  %v1642_v55 = vpack.c.bf16 %v1368_v52, %v1367_v51  ;;  %v1370_v58 = vld [vmem:[%s2062_s1 + $0x118] sm:$0xff] }
  0x13   : > { %1607 = vmatpush3.bf16.msra.mxu0 %v1606_v19  ;;  %1613 = vmatpush3.bf16.msra.mxu1 %v1612_v20  ;;  %v1648_v56 = vpack.c.bf16 %v1376_v54, %v1375_v53  ;;  %v1377_v59 = vld [vmem:[%s2062_s1 + $0x130] sm:$0xff]  ;;  %v1378_v60 = vld [vmem:[%s2062_s1 + $0x138] sm:$0xff]  ;;  %v1645_v61 = vpack.c.bf16 %v1370_v58, %v1369_v57  ;;  %v1383_v63 = vld [vmem:[%s2062_s1 + $0x140] sm:$0xff] }
  0x14   : > { %1608 = vmatprep.subr.bf16.mxu0 %v1717_v3  ;;  %1614 = vmatprep.subr.bf16.mxu1 %v1717_v3  ;;  %v1651_v62 = vpack.c.bf16 %v1378_v60, %v1377_v59  ;;  %v1384_v0 = vld [vmem:[%s2062_s1 + $0x148] sm:$0xff]  ;;  %v1391_v1 = vld [vmem:[%s2062_s1 + $0x160] sm:$0xff]  ;;  %v1385_v6 = vld [vmem:[%s2062_s1 + $0x150] sm:$0xff] }
  0x15   : > { %1491 = vmatprep.mubr.msk.f32.mxu0 %vm1718_vm0, %v1719_v11  ;;  %1502 = vmatprep.mubr.msk.f32.mxu1 %vm1718_vm0, %v1719_v11  ;;  %v1392_v2 = vld [vmem:[%s2062_s1 + $0x168] sm:$0xff]  ;;  %v1654_v4 = vpack.c.bf16 %v1384_v0, %v1383_v63  ;;  %v1386_v7 = vld [vmem:[%s2062_s1 + $0x158] sm:$0xff]  ;;  %v1393_v8 = vld [vmem:[%s2062_s1 + $0x170] sm:$0xff] }
  0x16   : > { %v1660_v5 = vpack.c.bf16 %v1392_v2, %v1391_v1  ;;  %v1394_v9 = vld [vmem:[%s2062_s1 + $0x178] sm:$0xff]  ;;  %v1657_v10 = vpack.c.bf16 %v1386_v7, %v1385_v6  ;;  %v1309_v13 = vld [vmem:[%s2063_s2] ss:$0 sm:$0xff]  ;;  %v1324_v19 = vld [vmem:[%s2063_s2 + $0x2] ss:$0 sm:$0xff] }
  0x17   : > { %1610 = vmatpush3.bf16.msra.mxu0 %v1609_v25  ;;  %1616 = vmatpush3.bf16.msra.mxu1 %v1615_v26  ;;  %v1663_v12 = vpack.c.bf16 %v1394_v9, %v1393_v8  ;;  %v1332_v20 = vld [vmem:[%s2063_s2 + $0x3] ss:$0 sm:$0xff]  ;;  %v1340_v27 = vld [vmem:[%s2063_s2 + $0x4] ss:$0 sm:$0xff]  ;;  %v1348_v28 = vld [vmem:[%s2063_s2 + $0x5] ss:$0 sm:$0xff] }
  0x18   : > { %1617 = vmatprep.subr.bf16.mxu0 %v1717_v3  ;;  %1623 = vmatprep.subr.bf16.mxu1 %v1717_v3  ;;  %v1356_v35 = vld [vmem:[%s2063_s2 + $0x6] ss:$0 sm:$0xff]  ;;  %v1364_v36 = vld [vmem:[%s2063_s2 + $0x7] ss:$0 sm:$0xff]  ;;  %v1388_v51 = vld [vmem:[%s2063_s2 + $0xa] ss:$0 sm:$0xff] }
  0x19   : > { %v1396_v52 = vld [vmem:[%s2063_s2 + $0xb] ss:$0 sm:$0xff] }
  0x1a   : > { %1492 = vmatmul.mubr.msk.f32.vlgmr.msra.gmra.mrb[2].mxu0 %vm211_vm1, %v1812_v18  ;;  %1503 = vmatmul.mubr.msk.f32.vlgmr.msra.gmra.mrb[2].mxu1 %vm211_vm1, %v1812_v18 }
  0x1b   : > { %1619 = vmatpush3.bf16.msra.mxu0 %v1618_v31  ;;  %1625 = vmatpush3.bf16.msra.mxu1 %v1624_v32 }
  0x1c   : > { %1620 = vmatprep.subr.bf16.mxu0 %v1717_v3  ;;  %1626 = vmatprep.subr.bf16.mxu1 %v1717_v3 }
  0x1d   : > { %1513 = vmatprep.mubr.msk.f32.mxu0 %vm1718_vm0, %v1719_v11  ;;  %1524 = vmatprep.mubr.msk.f32.mxu1 %vm1718_vm0, %v1719_v11 }
  0x1f   : > { %1622 = vmatpush3.bf16.msra.mxu0 %v1621_v37  ;;  %1628 = vmatpush3.bf16.msra.mxu1 %v1627_v38 }
  0x20   : > { %1629 = vmatprep.subr.bf16.mxu0 %v1717_v3  ;;  %1635 = vmatprep.subr.bf16.mxu1 %v1717_v3 }
  0x22   : > { %1514 = vmatmul.mubr.msk.f32.vlgmr.msra.gmra.mrb[4].mxu0 %vm211_vm1, %v1812_v18  ;;  %1525 = vmatmul.mubr.msk.f32.vlgmr.msra.gmra.mrb[4].mxu1 %vm211_vm1, %v1812_v18 }
  0x23   : > { %1631 = vmatpush3.bf16.msra.mxu0 %v1630_v43  ;;  %1637 = vmatpush3.bf16.msra.mxu1 %v1636_v44  ;;  %v1372_v43 = vld [vmem:[%s2063_s2 + $0x8] ss:$0 sm:$0xff]  ;;  %v1380_v44 = vld [vmem:[%s2063_s2 + $0x9] ss:$0 sm:$0xff] }
  0x24   : > { %1632 = vmatprep.subr.bf16.mxu0 %v1717_v3  ;;  %1638 = vmatprep.subr.bf16.mxu1 %v1717_v3 }
  0x25   : > { %1535 = vmatprep.mubr.msk.f32.mxu0 %vm1718_vm0, %v1719_v11  ;;  %1546 = vmatprep.mubr.msk.f32.mxu1 %vm1718_vm0, %v1719_v11 }
  0x27   : > { %1634 = vmatpush3.bf16.msra.mxu0 %v1633_v49  ;;  %1640 = vmatpush3.bf16.msra.mxu1 %v1639_v50 }
  0x28   : > { %1641 = vmatprep.subr.bf16.mxu0 %v1717_v3  ;;  %1647 = vmatprep.subr.bf16.mxu1 %v1717_v3 }
  0x2a   : > { %1536 = vmatmul.mubr.msk.f32.vlgmr.msra.gmra.mrb[6].mxu0 %vm211_vm1, %v1812_v18  ;;  %1547 = vmatmul.mubr.msk.f32.vlgmr.msra.gmra.mrb[6].mxu1 %vm211_vm1, %v1812_v18 }
  0x2b   : > { %1643 = vmatpush3.bf16.msra.mxu0 %v1642_v55  ;;  %1649 = vmatpush3.bf16.msra.mxu1 %v1648_v56 }
  0x2c   : > { %1644 = vmatprep.subr.bf16.mxu0 %v1717_v3  ;;  %1650 = vmatprep.subr.bf16.mxu1 %v1717_v3 }
  0x2d   : > { %1557 = vmatprep.mubr.msk.f32.mxu0 %vm1718_vm0, %v1719_v11  ;;  %1568 = vmatprep.mubr.msk.f32.mxu1 %vm1718_vm0, %v1719_v11 }
  0x2f   : > { %1646 = vmatpush3.bf16.msra.mxu0 %v1645_v61  ;;  %1652 = vmatpush3.bf16.msra.mxu1 %v1651_v62 }
  0x30   : > { %1653 = vmatprep.subr.bf16.mxu0 %v1717_v3  ;;  %1659 = vmatprep.subr.bf16.mxu1 %v1717_v3 }
  0x32   : > { %1558 = vmatmul.mubr.msk.f32.vlgmr.msra.gmra.mrb[8].mxu0 %vm211_vm1, %v1812_v18  ;;  %1569 = vmatmul.mubr.msk.f32.vlgmr.msra.gmra.mrb[8].mxu1 %vm211_vm1, %v1812_v18 }
  0x33   : > { %1655 = vmatpush3.bf16.msra.mxu0 %v1654_v4  ;;  %1661 = vmatpush3.bf16.msra.mxu1 %v1660_v5 }
  0x34   : > { %1656 = vmatprep.subr.bf16.mxu0 %v1717_v3  ;;  %1662 = vmatprep.subr.bf16.mxu1 %v1717_v3  ;;  %v1316_v3 = vld [vmem:[%s2063_s2 + $0x1] ss:$0 sm:$0xff] }
  0x35   : > { %1579 = vmatprep.mubr.msk.f32.mxu0 %vm1718_vm0, %v1719_v11  ;;  %1590 = vmatprep.mubr.msk.f32.mxu1 %vm1718_vm0, %v1719_v11 }
  0x37   : > { %1658 = vmatpush3.bf16.msra.mxu0 %v1657_v10  ;;  %1664 = vmatpush3.bf16.msra.mxu1 %v1663_v12 }
  0x3a   : > { %1580 = vmatmul.mubr.msk.f32.vlgmr.msra.gmra.mrb[10].mxu0 %vm211_vm1, %v1812_v18  ;;  %1591 = vmatmul.mubr.msk.f32.vlgmr.msra.gmra.mrb[10].mxu1 %vm211_vm1, %v1812_v18 }
  0xe5   : > { %v281_v11 = vpop.f32.mrb[0].mxu0  ;;  %v366_v15 = vpop.f32.mrb[0].mxu1 }
  0xe6   : > { %v282_v14 = vadd.f32 %v1309_v13, %v281_v11  ;;  %v1471_v16 = vpop.f32.mrb[1].mxu0  ;;  %v367_v17 = vadd.f32 %v1316_v3, %v366_v15  ;;  %v1482_v18 = vpop.f32.mrb[1].mxu1 }
  0xe8   : > { %286 = vst.msk [vmem:[%s1996_s4] sm:$0xff] %vm285_vm2, %v282_v14  ;;  %1318 = vst.msk [vmem:[%s1996_s4 + $0x8] sm:$0xff] %vm285_vm2, %v367_v17 }
  0xed   : > { %v451_v21 = vpop.f32.mrb[2].mxu0  ;;  %v536_v23 = vpop.f32.mrb[2].mxu1 }
  0xee   : > { %v452_v22 = vadd.f32 %v1324_v19, %v451_v21  ;;  %v1493_v24 = vpop.f32.mrb[3].mxu0  ;;  %v537_v25 = vadd.f32 %v1332_v20, %v536_v23  ;;  %v1504_v26 = vpop.f32.mrb[3].mxu1 }
  0xf0   : > { %1326 = vst.msk [vmem:[%s1996_s4 + $0x10] sm:$0xff] %vm285_vm2, %v452_v22  ;;  %1334 = vst.msk [vmem:[%s1996_s4 + $0x18] sm:$0xff] %vm285_vm2, %v537_v25 }
  0xf5   : > { %v621_v29 = vpop.f32.mrb[4].mxu0  ;;  %v706_v31 = vpop.f32.mrb[4].mxu1 }
  0xf6   : > { %v622_v30 = vadd.f32 %v1340_v27, %v621_v29  ;;  %v1515_v32 = vpop.f32.mrb[5].mxu0  ;;  %v707_v33 = vadd.f32 %v1348_v28, %v706_v31  ;;  %v1526_v34 = vpop.f32.mrb[5].mxu1 }
  0xf8   : > { %1342 = vst.msk [vmem:[%s1996_s4 + $0x20] sm:$0xff] %vm285_vm2, %v622_v30  ;;  %1350 = vst.msk [vmem:[%s1996_s4 + $0x28] sm:$0xff] %vm285_vm2, %v707_v33 }
  0xfd   : > { %v791_v37 = vpop.f32.mrb[6].mxu0  ;;  %v876_v39 = vpop.f32.mrb[6].mxu1 }
  0xfe   : > { %v792_v38 = vadd.f32 %v1356_v35, %v791_v37  ;;  %v1537_v40 = vpop.f32.mrb[7].mxu0  ;;  %v877_v41 = vadd.f32 %v1364_v36, %v876_v39  ;;  %v1548_v42 = vpop.f32.mrb[7].mxu1 }
 0x100   : > { %1358 = vst.msk [vmem:[%s1996_s4 + $0x30] sm:$0xff] %vm285_vm2, %v792_v38  ;;  %1366 = vst.msk [vmem:[%s1996_s4 + $0x38] sm:$0xff] %vm285_vm2, %v877_v41 }
 0x105   : > { %v961_v45 = vpop.f32.mrb[8].mxu0  ;;  %v1046_v47 = vpop.f32.mrb[8].mxu1 }
 0x106   : > { %v962_v46 = vadd.f32 %v1372_v43, %v961_v45  ;;  %v1559_v48 = vpop.f32.mrb[9].mxu0  ;;  %v1047_v49 = vadd.f32 %v1380_v44, %v1046_v47  ;;  %v1570_v50 = vpop.f32.mrb[9].mxu1 }
 0x108   : > { %1374 = vst.msk [vmem:[%s1996_s4 + $0x40] sm:$0xff] %vm285_vm2, %v962_v46  ;;  %1382 = vst.msk [vmem:[%s1996_s4 + $0x48] sm:$0xff] %vm285_vm2, %v1047_v49 }
 0x10d   : > { %v1131_v53 = vpop.f32.mrb[10].mxu0  ;;  %v1216_v55 = vpop.f32.mrb[10].mxu1 }
 0x10e   : > { %v1132_v54 = vadd.f32 %v1388_v51, %v1131_v53  ;;  %v1581_v56 = vpop.f32.mrb[11].mxu0  ;;  %v1217_v57 = vadd.f32 %v1396_v52, %v1216_v55  ;;  %v1592_v58 = vpop.f32.mrb[11].mxu1 }
 0x110   : > { %1390 = vst.msk [vmem:[%s1996_s4 + $0x50] sm:$0xff] %vm285_vm2, %v1132_v54  ;;  %1398 = vst.msk [vmem:[%s1996_s4 + $0x58] sm:$0xff] %vm285_vm2, %v1217_v57 }
 0x111 PF: > { %s13_s14 = sadd.s32 1, %s1715_s14   ;;  %s2065_s12 = smov %s1711_s13 }
 0x112   : > { %p10_p5 = scmp.ge.s32.totalorder %s13_s14, 4   ;;  %s2066_s13 = smov %s2068_s15 }
 0x114   :  { %12 = sbr.rel (!%p10_p5) target bundleno = 2 (0x2), region = 95 }

</bundles_post_ra>
